<compile_context>
chip_gen: v6e
topology: v6e:2x2x1
jax: 0.10.0
libtpu: 0.0.40
codegen_flags: <defaults>
</compile_context>

<pallas_src>
import functools
import math

import jax
import jax.numpy as jnp
from jax import lax
from jax.experimental import pallas as pl
from jax.experimental.pallas import tpu as pltpu


# ----------------------------------------------------------- TPU detection ----
def _device_kind():
    try:
        return jax.devices()[0].device_kind.lower()
    except Exception:
        return ""


def _vmem_limit_bytes():
    """Generation-aware scoped-VMEM budget (None -> leave compiler default)."""
    kind = _device_kind()
    if "v7" in kind:
        return 48 * 1024 * 1024          # 64 MiB physical per TensorCore
    if "v5" in kind or "v6" in kind:
        return 96 * 1024 * 1024          # 128 MiB physical
    return None


def _default_compute_dtype():
    """bf16 MXU operands (f32 accumulation) on bf16-native v6e/v7x; f32 on v5e
    (no bf16 VPU/EUP) and unknown backends for closer PyTorch-f32 parity."""
    kind = _device_kind()
    if "v6" in kind or "v7" in kind:
        return jnp.bfloat16
    return jnp.float32


def _compiler_params(dimension_semantics):
    kwargs = dict(dimension_semantics=dimension_semantics)
    limit = _vmem_limit_bytes()
    if limit is not None:
        kwargs["vmem_limit_bytes"] = limit
    return pltpu.CompilerParams(**kwargs)


# ------------------------------------------------------------------ linear ----
def _pick_tile(dim, target, granule):
    """Largest tile <= target that divides `dim` and is a multiple of `granule`,
    falling back to the full dimension (block == array extent is always legal)."""
    if dim <= target:
        return dim
    t = (target // granule) * granule
    while t >= granule:
        if dim % t == 0:
            return t
        t -= granule
    return dim


def _linear_fullk_kernel(x_ref, w_ref, b_ref, o_ref, *, compute_dtype):
    acc = jnp.dot(x_ref[...].astype(compute_dtype),
                  w_ref[...].astype(compute_dtype),
                  preferred_element_type=jnp.float32)
    o_ref[...] = (acc + b_ref[...].astype(jnp.float32)).astype(o_ref.dtype)


def _linear_ktiled_kernel(x_ref, w_ref, b_ref, o_ref, acc_ref, *, compute_dtype):
    @pl.when(pl.program_id(2) == 0)
    def _init():
        acc_ref[...] = jnp.zeros(acc_ref.shape, jnp.float32)

    acc_ref[...] += jnp.dot(x_ref[...].astype(compute_dtype),
                            w_ref[...].astype(compute_dtype),
                            preferred_element_type=jnp.float32)

    @pl.when(pl.program_id(2) == pl.num_programs(2) - 1)
    def _finalize():
        o_ref[...] = (acc_ref[...]
                      + b_ref[...].astype(jnp.float32)).astype(o_ref.dtype)


def linear(x, w, b, *, compute_dtype=None, out_dtype=None, tm=512, tn=768, tk=None):
    """x: (M, K), w: (K, N), b: (N,) -> (M, N)."""
    M, K = x.shape
    _, N = w.shape
    compute_dtype = jnp.dtype(compute_dtype) if compute_dtype is not None else x.dtype
    out_dtype = jnp.dtype(out_dtype) if out_dtype is not None else x.dtype

    gran_m = 16 if x.dtype == jnp.bfloat16 else 8
    tm = _pick_tile(M, tm, gran_m)
    tn = _pick_tile(N, tn, 128)

    itemsize = jnp.dtype(x.dtype).itemsize
    if tk is None:
        # Prefer a full-K contraction (no K axis, no accumulator RMW, no
        # per-step pl.when) when the per-step operand footprint stays modest;
        # this also removes the (N/tn)-fold re-reads of each x tile.
        tk = K if K * (tm + tn) * itemsize <= 8 * 1024 * 1024 else 1024
    tk = _pick_tile(K, tk, 128)

    b2 = b.reshape(1, N)
    cost = pl.CostEstimate(
        flops=int(2 * M * N * K),
        transcendentals=0,
        bytes_accessed=int((M * K + K * N) * itemsize
                           + M * N * jnp.dtype(out_dtype).itemsize + N * 4),
    )

    if tk == K:
        grid = (M // tm, N // tn)
        return pl.pallas_call(
            functools.partial(_linear_fullk_kernel, compute_dtype=compute_dtype),
            out_shape=jax.ShapeDtypeStruct((M, N), out_dtype),
            grid=grid,
            in_specs=[
                pl.BlockSpec((tm, K), lambda i, j: (i, 0)),
                pl.BlockSpec((K, tn), lambda i, j: (0, j)),
                pl.BlockSpec((1, tn), lambda i, j: (0, j)),
            ],
            out_specs=pl.BlockSpec((tm, tn), lambda i, j: (i, j)),
            compiler_params=_compiler_params(("parallel", "parallel")),
            cost_estimate=cost,
        )(x, w, b2)

    grid = (M // tm, N // tn, K // tk)
    return pl.pallas_call(
        functools.partial(_linear_ktiled_kernel, compute_dtype=compute_dtype),
        out_shape=jax.ShapeDtypeStruct((M, N), out_dtype),
        grid=grid,
        in_specs=[
            pl.BlockSpec((tm, tk), lambda i, j, k: (i, k)),
            pl.BlockSpec((tk, tn), lambda i, j, k: (k, j)),
            pl.BlockSpec((1, tn), lambda i, j, k: (0, j)),
        ],
        out_specs=pl.BlockSpec((tm, tn), lambda i, j, k: (i, j)),
        scratch_shapes=[pltpu.VMEM((tm, tn), jnp.float32)],
        compiler_params=_compiler_params(("parallel", "parallel", "arbitrary")),
        cost_estimate=cost,
    )(x, w, b2)


# --------------------------------------------------------------- attention ----
def _flash_attn_kernel(q_ref, k_ref, v_ref, o_ref, m_ref, l_ref, acc_ref, *,
                       heads_per_block, head_dim, q_block, kv_block, compute_dtype):
    """Online-softmax causal attention for one (batch, head-group, q-tile) over
    a KV grid axis.  q_ref/o_ref: (1, q_block, W); k_ref/v_ref: (1, kv_block, W)."""
    D = head_dim
    qi = pl.program_id(2)
    ki = pl.program_id(3)
    q_start = qi * q_block
    kv_start = ki * kv_block
    scale = 1.0 / math.sqrt(D)
    mask_value = jnp.float32(jnp.finfo(jnp.float32).min)

    @pl.when(ki == 0)
    def _init():
        m_ref[...] = jnp.full(m_ref.shape, -jnp.inf, jnp.float32)
        l_ref[...] = jnp.zeros(l_ref.shape, jnp.float32)
        acc_ref[...] = jnp.zeros(acc_ref.shape, jnp.float32)

    # Causal block skipping: KV blocks entirely above the diagonal contribute
    # nothing -- skip their MXU/VPU work altogether (~2x attention FLOP saving).
    @pl.when(kv_start <= q_start + q_block - 1)
    def _compute():
        # Per-tile causal mask (q_block x kv_block), shared by every head in
        # the group; all-true for blocks strictly below the diagonal.  Never
        # (T, T)-sized.
        row = q_start + lax.broadcasted_iota(jnp.int32, (q_block, kv_block), 0)
        col = kv_start + lax.broadcasted_iota(jnp.int32, (q_block, kv_block), 1)
        causal = row >= col

        for h in range(heads_per_block):
            sl = slice(h * D, (h + 1) * D)
            # Fold 1/sqrt(D) into q (q_block*D mults instead of q_block*kv_block).
            q = (q_ref[0, :, sl] * scale).astype(compute_dtype)
            k = k_ref[0, :, sl].astype(compute_dtype)
            v = v_ref[0, :, sl].astype(compute_dtype)

            # Contract the last dims directly: no explicit k.T relayout.
            s = lax.dot_general(q, k, (((1,), (1,)), ((), ())),
                                preferred_element_type=jnp.float32)
            s = jnp.where(causal, s, mask_value)

            m_prev = m_ref[h]                                   # (q_block, 1)
            l_prev = l_ref[h]
            m_new = jnp.maximum(m_prev, jnp.max(s, axis=-1, keepdims=True))
            alpha = jnp.exp(m_prev - m_new)
            p = jnp.exp(s - m_new)
            l_ref[h] = alpha * l_prev + jnp.sum(p, axis=-1, keepdims=True)
            m_ref[h] = m_new
            pv = jnp.dot(p.astype(compute_dtype), v,
                         preferred_element_type=jnp.float32)     # (q_block, D)
            acc_ref[:, sl] = alpha * acc_ref[:, sl] + pv

    @pl.when(ki == pl.num_programs(3) - 1)
    def _finalize():
        outs = []
        for h in range(heads_per_block):
            sl = slice(h * D, (h + 1) * D)
            # Exact division (not approx reciprocal) for PyTorch parity.
            outs.append(acc_ref[:, sl] / l_ref[h])
        out = outs[0] if len(outs) == 1 else jnp.concatenate(outs, axis=-1)
        o_ref[0] = out.astype(o_ref.dtype)                       # lane-dense store


def _attn_small_kernel(qkv_ref, o_ref, *, num_heads, head_dim, embed_dim,
                       compute_dtype):
    """Fallback for unaligned head widths: one batch row, single fused qkv block,
    static per-head slices, full (T, T) scores (tiny T only)."""
    D, E = head_dim, embed_dim
    T = qkv_ref.shape[1]
    scale = 1.0 / math.sqrt(D)
    mask_value = jnp.float32(jnp.finfo(jnp.float32).min)

    row = lax.broadcasted_iota(jnp.int32, (T, T), 0)
    col = lax.broadcasted_iota(jnp.int32, (T, T), 1)
    causal = row >= col

    outs = []
    # TODO(synk): bound this per-head unroll (heads grid axis / fori_loop) once
    #             dynamic lane-offset slicing is cheap; this path only serves
    #             small unaligned configs, so live ranges stay tiny here.
    for h in range(num_heads):
        q = (qkv_ref[0, :, h * D:(h + 1) * D] * scale).astype(compute_dtype)
        k = qkv_ref[0, :, E + h * D:E + (h + 1) * D].astype(compute_dtype)
        v = qkv_ref[0, :, 2 * E + h * D:2 * E + (h + 1) * D].astype(compute_dtype)

        s = lax.dot_general(q, k, (((1,), (1,)), ((), ())),
                            preferred_element_type=jnp.float32)
        s = jnp.where(causal, s, mask_value)
        m = jnp.max(s, axis=-1, keepdims=True)
        e = jnp.exp(s - m)
        p = e / jnp.sum(e, axis=-1, keepdims=True)               # exact softmax
        o = jnp.dot(p.astype(compute_dtype), v,
                    preferred_element_type=jnp.float32)
        outs.append(o.astype(o_ref.dtype))

    o_ref[0] = outs[0] if len(outs) == 1 else jnp.concatenate(outs, axis=-1)


def _pick_head_group(num_heads, head_dim):
    """Smallest head-group size hb dividing num_heads with hb*head_dim a
    multiple of 128 lanes (lane-dense blocks).  None if impossible."""
    for hb in range(1, num_heads + 1):
        if num_heads % hb == 0 and (hb * head_dim) % 128 == 0:
            return hb
    return None


def attention(qkv, num_heads, *, compute_dtype=None, q_block=None, kv_block=None):
    """qkv: (B, T, 3E) fused c_attn output -> (B, T, E) merged-head output."""
    B, T, threeE = qkv.shape
    E = threeE // 3
    H = num_heads
    D = E // H
    compute_dtype = jnp.dtype(compute_dtype) if compute_dtype is not None else qkv.dtype
    out_shape = jax.ShapeDtypeStruct((B, T, E), qkv.dtype)
    cost = pl.CostEstimate(
        flops=int(4 * B * H * T * T * D),
        transcendentals=int(B * H * T * T),
        bytes_accessed=int(4 * B * T * E * jnp.dtype(qkv.dtype).itemsize),
    )

    hb = _pick_head_group(H, D)
    if hb is None:
        kernel = functools.partial(_attn_small_kernel, num_heads=H, head_dim=D,
                                   embed_dim=E, compute_dtype=compute_dtype)
        return pl.pallas_call(
            kernel,
            out_shape=out_shape,
            grid=(B,),
            in_specs=[pl.BlockSpec((1, T, 3 * E), lambda b: (b, 0, 0))],
            out_specs=pl.BlockSpec((1, T, E), lambda b: (b, 0, 0)),
            compiler_params=_compiler_params(("parallel",)),
            cost_estimate=cost,
        )(qkv)

    # Flash-style KV-tiled path: lane-dense head-group blocks carved directly
    # out of the fused layout; q-tile axis also guarantees >=2 parallel steps
    # for v7x's two TensorCores even at B=1.
    W = hb * D
    G = E // W
    gran = 16 if qkv.dtype == jnp.bfloat16 else 8
    target = 512 if compute_dtype == jnp.bfloat16 else 256
    tq = _pick_tile(T, q_block if q_block is not None else target, gran)
    tkv = _pick_tile(T, kv_block if kv_block is not None else target, gran)
    grid = (B, G, T // tq, T // tkv)

    kernel = functools.partial(_flash_attn_kernel, heads_per_block=hb, head_dim=D,
                               q_block=tq, kv_block=tkv, compute_dtype=compute_dtype)
    return pl.pallas_call(
        kernel,
        out_shape=out_shape,
        grid=grid,
        in_specs=[
            pl.BlockSpec((1, tq, W), lambda b, g, qi, ki: (b, qi, g)),
            pl.BlockSpec((1, tkv, W), lambda b, g, qi, ki: (b, ki, G + g)),
            pl.BlockSpec((1, tkv, W), lambda b, g, qi, ki: (b, ki, 2 * G + g)),
        ],
        out_specs=pl.BlockSpec((1, tq, W), lambda b, g, qi, ki: (b, qi, g)),
        scratch_shapes=[
            pltpu.VMEM((hb, tq, 1), jnp.float32),   # running max  m
            pltpu.VMEM((hb, tq, 1), jnp.float32),   # running sum  l
            pltpu.VMEM((tq, W), jnp.float32),       # output accumulator
        ],
        compiler_params=_compiler_params(
            ("parallel", "parallel", "parallel", "arbitrary")),
        cost_estimate=cost,
    )(qkv, qkv, qkv)


# ----------------------------------------------------------------- wrapper ----
def gpt2_attention_forward(hidden_states, params, num_heads, *,
                           compute_dtype=None, q_block=None, kv_block=None):
    """Mirrors GPT2Attention.forward for eval-mode self-attention, returning
    (attn_output, present) with use_cache=False -> present=None."""
    compute_dtype = jnp.dtype(compute_dtype if compute_dtype is not None
                              else _default_compute_dtype())
    B, T, E = hidden_states.shape
    # bf16 intermediates on bf16-native chips (halves HBM/VMEM traffic); the
    # final c_proj output stays in the input dtype.
    inter_dtype = compute_dtype if compute_dtype == jnp.bfloat16 else hidden_states.dtype

    x2d = hidden_states.reshape(B * T, E)
    qkv = linear(x2d, params["c_attn_w"], params["c_attn_b"],
                 compute_dtype=compute_dtype,
                 out_dtype=inter_dtype).reshape(B, T, 3 * E)

    attn_out = attention(qkv, num_heads, compute_dtype=compute_dtype,
                         q_block=q_block, kv_block=kv_block)      # (B, T, E)

    out = linear(attn_out.reshape(B * T, E),
                 params["c_proj_w"], params["c_proj_b"],
                 compute_dtype=compute_dtype,
                 out_dtype=hidden_states.dtype).reshape(B, T, E)
    present = None  # use_cache=False
    return out, present


# --------------------------------------------------------------- reference ----
def gpt2_attention_reference(hidden_states, params, num_heads):
    """Pure-JAX f32 reference mirroring the PyTorch module."""
    B, T, E = hidden_states.shape
    D = E // num_heads
    x = hidden_states.astype(jnp.float32)
    qkv = x @ params["c_attn_w"] + params["c_attn_b"]
    q, k, v = jnp.split(qkv, 3, axis=-1)

    def split_heads(t):
        return t.reshape(B, T, num_heads, D).transpose(0, 2, 1, 3)

    q, k, v = map(split_heads, (q, k, v))
    s = jnp.einsum("bhqd,bhkd->bhqk", q, k) / jnp.sqrt(jnp.float32(D))
    mask = jnp.tril(jnp.ones((T, T), bool))
    s = jnp.where(mask[None, None], s, jnp.finfo(jnp.float32).min)
    p = jax.nn.softmax(s, axis=-1)
    o = jnp.einsum("bhqk,bhkd->bhqd", p, v)
    o = o.transpose(0, 2, 1, 3).reshape(B, T, E)
    return o @ params["c_proj_w"] + params["c_proj_b"]


# ------------------------------------------------------------------- setup ----
def init_params(key, embed_dim):
    # HF GPT-2 Conv1D: weight (in, out) ~ N(0, 0.02), bias zeros.
    k1, k2 = jax.random.split(key)
    return {
        "c_attn_w": 0.02 * jax.random.normal(k1, (embed_dim, 3 * embed_dim), jnp.float32),
        "c_attn_b": jnp.zeros((3 * embed_dim,), jnp.float32),
        "c_proj_w": 0.02 * jax.random.normal(k2, (embed_dim, embed_dim), jnp.float32),
        "c_proj_b": jnp.zeros((embed_dim,), jnp.float32),
    }


if __name__ == "__main__":
    def _check(B, T, E, H, key, **attn_kwargs):
        pkey, xkey = jax.random.split(key)
        params = init_params(pkey, E)
        hidden_states = jax.random.normal(xkey, (B, T, E), jnp.float32)
        out, present = gpt2_attention_forward(hidden_states, params,
                                              num_heads=H, **attn_kwargs)
        out = jax.block_until_ready(out)
        assert out.shape == (B, T, E)
        assert present is None
        ref = gpt2_attention_reference(hidden_states, params, H)
        if jnp.dtype(_default_compute_dtype()) == jnp.bfloat16:
            ok = jnp.allclose(out.astype(jnp.float32), ref, atol=1e-2, rtol=1e-1)
        else:
            ok = jnp.allclose(out.astype(jnp.float32), ref, atol=1e-4, rtol=1e-3)
        assert bool(ok), f"kernel/reference mismatch for config {(B, T, E, H)}"

    key = jax.random.PRNGKey(0)
    k1, k2 = jax.random.split(key)

    # Small config (batch=2, seq=8, hidden=32, heads=4): unaligned head width,
    # exercises the single-block fallback attention path.
    _check(2, 8, 32, 4, k1)

    # Lane-dense config exercising the flash-tiled causal path with 2x2
    # (q-tile, kv-tile) blocks: diagonal, below-diagonal and skipped blocks.
    _check(2, 256, 128, 2, k2, q_block=128, kv_block=128)

    print("KERNEL_OK")
</pallas_src>

<mosaic_0001>
module attributes {stable_mosaic.version = 11 : i64} {
  func.func @_linear_fullk_kernel(%arg0: i32, %arg1: i32, %arg2: memref<16x32xf32, #tpu.memory_space<vmem>>, %arg3: memref<32x96xf32, #tpu.memory_space<vmem>>, %arg4: memref<1x96xf32, #tpu.memory_space<vmem>>, %arg5: memref<16x96xf32, #tpu.memory_space<vmem>>) attributes {dimension_semantics = [#tpu.dimension_semantics<parallel>, #tpu.dimension_semantics<parallel>], iteration_bounds = array<i64: 1, 1>, scalar_prefetch = 0 : i64, scratch_operands = 0 : i64, tpu.core_type = #tpu.core_type<tc>, window_params = [{transform_indices = @transform_0, window_bounds = array<i64: 16, 32>}, {transform_indices = @transform_1, window_bounds = array<i64: 32, 96>}, {transform_indices = @transform_2, window_bounds = array<i64: 1, 96>}, {transform_indices = @transform_3, window_bounds = array<i64: 16, 96>}]} {
    %c0 = arith.constant 0 : index
    %c0_0 = arith.constant 0 : index
    %0 = vector.load %arg2[%c0, %c0_0] : memref<16x32xf32, #tpu.memory_space<vmem>>, vector<16x32xf32>
    %c0_1 = arith.constant 0 : index
    %c0_2 = arith.constant 0 : index
    %1 = vector.load %arg3[%c0_1, %c0_2] : memref<32x96xf32, #tpu.memory_space<vmem>>, vector<32x96xf32>
    %cst = arith.constant dense<0.000000e+00> : vector<16x96xf32>
    %2 = tpu.matmul %0, %1, %cst {dimension_numbers = #tpu.dot_dimension_numbers<[1], [0], [0], [1], [0, 0, 1, 1], [], []>} : vector<16x32xf32>, vector<32x96xf32>, vector<16x96xf32> -> vector<16x96xf32>
    %c0_3 = arith.constant 0 : index
    %c0_4 = arith.constant 0 : index
    %3 = vector.load %arg4[%c0_3, %c0_4] : memref<1x96xf32, #tpu.memory_space<vmem>>, vector<1x96xf32>
    %4 = vector.broadcast %3 : vector<1x96xf32> to vector<16x96xf32>
    %5 = arith.addf %2, %4 : vector<16x96xf32>
    %c0_5 = arith.constant 0 : index
    %c0_6 = arith.constant 0 : index
    %6 = vector.load %arg5[%c0_5, %c0_6] : memref<16x96xf32, #tpu.memory_space<vmem>>, vector<16x96xf32>
    tpu.vector_store %arg5[%c0_5, %c0_6], %5 {strides = array<i32>} : memref<16x96xf32, #tpu.memory_space<vmem>>, vector<16x96xf32>,
    return
  }
  func.func @transform_0(%arg0: i32, %arg1: i32) -> (i32, i32) {
    %c0_i32 = arith.constant 0 : i32
    %c0_i32_0 = arith.constant 0 : i32
    return %arg0, %c0_i32 : i32, i32
  }
  func.func @transform_1(%arg0: i32, %arg1: i32) -> (i32, i32) {
    %c0_i32 = arith.constant 0 : i32
    %c0_i32_0 = arith.constant 0 : i32
    return %c0_i32, %arg1 : i32, i32
  }
  func.func @transform_2(%arg0: i32, %arg1: i32) -> (i32, i32) {
    %c0_i32 = arith.constant 0 : i32
    %c0_i32_0 = arith.constant 0 : i32
    return %c0_i32, %arg1 : i32, i32
  }
  func.func @transform_3(%arg0: i32, %arg1: i32) -> (i32, i32) {
    %c0_i32 = arith.constant 0 : i32
    return %arg0, %arg1 : i32, i32
  }
}

</mosaic_0001>

<bundles_post_ra>
// kernel: tpu_custom_call.1
= control target key start
LH: loop header
LB: loop body
LE: loop exit
PB: predicated region body
PF: predicated region fallthrough
CT: control target
= control target key end

     0   :  { %8 = vsyncpa [#allocation3], 0  ;;  %s298_s0 = inlined_call_operand.hbm [shape: f32[16,32], index: 0, kind: input, shape index: {}]   ;;  %s299_s1 = inlined_call_operand.hbm [shape: f32[32,96], index: 1, kind: input, shape index: {}]   ;;  %s300_s2 = inlined_call_operand.vmem [shape: f32[1,96], index: 2, kind: input, shape index: {}]   ;;  %s301_s3 = inlined_call_operand.hbm [shape: f32[16,96], index: 3, kind: output, shape index: {}]  }
   0x1   :  { %9 = vsyncpa [#allocation6], 0 }
   0x2   :  { %10 = vsyncpa [#allocation4], 0  ;;  %s250_s12 = smov [#allocation2]  }
   0x3   :  { %s16_s13 = sshll.u32 %s250_s12, 4  ;;  %s17_s13 = int_to_ptr.vmem [resolvable:$true] %s16_s13 }
   0x4   :  { %s192_s14 = scalar_lea.vmem %s17_s13, 256  ;;  %p197_p1 = scmp.lt.s32.totalorder %s17_s13, %s17_s13 }
   0x5   :  { %p193_p0 = scmp.ne.s32.totalorder %s17_s13, %s192_s14  ;;  %p198_p2 = scmp.lt.s32.totalorder %s192_s14, %s192_s14 }
   0x7   :  { %p199_p3 = por %p198_p2, %p197_p1 }
   0x9   :  { %p200_p4 = pnand %p199_p3, %p193_p0 }
   0xb   :  { %203 = shalt.err (!%p200_p4)
}
   0xc   :  { %s251_s15 = smov 128   ;;  %s252_s16 = smov 8  }
   0xd   :  { %22 = dma.hbm_to_vmem [thread:$0]  %s298_s0, 256, %s17_s13, [#allocation3], %s251_s15, %s251_s15, %s252_s16  }
   0xe   :  { %s253_s19 = smov [#allocation5]  }
   0xf   :  { %s28_s20 = sshll.u32 %s253_s19, 4  ;;  %s29_s20 = int_to_ptr.vmem [resolvable:$true] %s28_s20 }
  0x10   :  { %s212_s21 = scalar_lea.vmem %s29_s20, 512  ;;  %p217_p6 = scmp.lt.s32.totalorder %s29_s20, %s29_s20 }
  0x11   :  { %p213_p5 = scmp.ne.s32.totalorder %s29_s20, %s212_s21  ;;  %p218_p7 = scmp.lt.s32.totalorder %s212_s21, %s212_s21 }
  0x13   :  { %p219_p8 = por %p218_p7, %p217_p6 }
  0x15   :  { %p220_p9 = pnand %p219_p8, %p213_p5 }
  0x17   :  { %223 = shalt.err (!%p220_p9)
}
  0x18   :  { %34 = dma.hbm_to_vmem [thread:$0]  %s299_s1, 512, %s29_s20, [#allocation6], %s251_s15, %s251_s15, %s252_s16  }
  0x19   :  { %244 = dma.done.wait [#allocation3], 256  }
  0x1a   :  { %245 = vsyncadd [#allocation3], 4294967040 }
  0x1b   :  { %246 = dma.done.wait [#allocation6], 512  }
  0x1c   :  { %247 = vsyncadd [#allocation6], 4294966784  ;;  %vm56_vm0 = vcmask 261120   ;;  %v48_v0 = vld [vmem:[#allocation5 + $0x18] sm:$0xff]  ;;  %v47_v1 = vld [vmem:[#allocation5 + $0x10] sm:$0xff]  ;;  %vm138_vm1 = vcmask 785408  }
  0x1d   :  { %168 = vmatprep.subr.mxu0 %v48_v0  ;;  %v43_v2 = vld [vmem:[#allocation2] sm:$0xff]  ;;  %v46_v3 = vld [vmem:[#allocation5 + $0x8] sm:$0xff]  ;;  %v45_v4 = vld [vmem:[#allocation5] sm:$0xff]  ;;  %s254_s24 = smov [#allocation7]  }
  0x1e   :  { %169 = vmatpush3.msra.mxu0 %v48_v0  ;;  %176 = vmatprep.mubr.msk.f32.mxu0 %vm56_vm0, %v43_v2  ;;  %v44_v5 = vld [vmem:[#allocation2 + $0x8] sm:$0xff]  ;;  %v159_v6 = vld [vmem:[%s300_s2] ss:$0 sm:$0xff]  ;;  %s146_s25 = sshll.u32 %s254_s24, 4  ;;  %s147_s25 = int_to_ptr.vmem [resolvable:$true] %s146_s25 }
  0x1f   :  { %170 = vmatprep.subr.mxu0 %v47_v1  ;;  %s224_s26 = scalar_lea.vmem %s147_s25, 256  ;;  %p229_p11 = scmp.lt.s32.totalorder %s147_s25, %s147_s25 }
  0x20   :  { %171 = vmatpush3.msra.mxu0 %v47_v1  ;;  %p225_p10 = scmp.ne.s32.totalorder %s147_s25, %s224_s26  ;;  %p230_p12 = scmp.lt.s32.totalorder %s224_s26, %s224_s26 }
  0x21   :  { %172 = vmatprep.subr.mxu0 %v46_v3 }
  0x22   :  { %173 = vmatpush3.msra.mxu0 %v46_v3  ;;  %p231_p13 = por %p230_p12, %p229_p11 }
  0x23   :  { %174 = vmatprep.subr.mxu0 %v45_v4 }
  0x24   :  { %175 = vmatpush3.msra.mxu0 %v45_v4  ;;  %p232_p0 = pnand %p231_p13, %p225_p10 }
  0x25   :  { %177 = vmatmul.mubr.msk.f32.vlgmr.msra.gmra.mxu0 %vm56_vm0, %v44_v5 }
  0xe5   :  { %v178_v7 = vpop.f32.mrf.mxu0 }
  0xe6   :  { %v135_v8 = vadd.f32 %v178_v7, %v159_v6 }
  0xe7   :  { %v129_v9 = vpop.f32.mrf.mxu0 }
  0xe8   :  { %v130_v10 = vadd.f32 %v159_v6, %v129_v9  ;;  %140 = vst.msk [vmem:[#allocation7 + $0x8] sm:$0xff] %vm138_vm1, %v135_v8 }
  0xea   :  { %139 = vst.msk [vmem:[#allocation7] sm:$0xff] %vm138_vm1, %v130_v10 }
  0xeb   :  { %235 = shalt.err (!%p232_p0)
}
  0xec   :  { %152 = dma.vmem_to_hbm [thread:$0]  %s147_s25, 256, %s301_s3, [#allocation4], %s251_s15, %s251_s15, %s252_s16  }
  0xed   :  { %248 = dma.done.wait [#allocation4], 256  }
  0xee   :  { %249 = vsyncadd [#allocation4], 4294967040 }
  0xef   :  { %156 = vsyncpa [#allocation3], 1 }
  0xf0   :  { %157 = vsyncpa [#allocation6], 1 }
  0xf1   :  { %158 = vsyncpa [#allocation4], 1 }

</bundles_post_ra>
